<compile_context>
chip_gen: v6e
topology: v6e:2x2x1
jax: 0.10.0
libtpu: 0.0.40
codegen_flags: <defaults>
</compile_context>

<pallas_src>
import math

import jax
import jax.numpy as jnp
from jax import lax
from jax.experimental import pallas as pl
from jax.experimental.pallas import tpu as pltpu

# Small demo shapes consistent with the module.
BATCH = 2
SEQ = 8
HIDDEN = 32
NUM_HEADS = 4
HEAD_DIM = HIDDEN // NUM_HEADS
FF = HIDDEN * 4
EPS = 1e-5  # nn.LayerNorm default
ROWS = BATCH * SEQ  # collapsed (batch * seq) row count

# Packed-vector slab row indices (one (8, 128) f32 tile holding every small param).
_ROW_N1G, _ROW_N1B, _ROW_BQKV, _ROW_BO, _ROW_N2G, _ROW_N2B, _ROW_B1, _ROW_B2 = range(8)


def _layernorm(x, gamma, beta):
    mu = jnp.mean(x, axis=-1, keepdims=True)
    var = jnp.mean((x - mu) ** 2, axis=-1, keepdims=True)
    return (x - mu) * lax.rsqrt(var + EPS) * gamma + beta


def transformer_layer_kernel(x_ref, bias_ref, vec_ref, wqkv_ref, wo_ref, w1_ref, w2_ref, o_ref):
    # Whole problem in one invocation: x_ref is the (B*S, H) = (16, 32) slab.
    x = x_ref[...].astype(jnp.float32)

    # Unpack the single (8, 128) packed-vector slab with static slices (one load, no DMAs).
    vec = vec_ref[...]
    n1g = vec[_ROW_N1G:_ROW_N1G + 1, :HIDDEN]
    n1b = vec[_ROW_N1B:_ROW_N1B + 1, :HIDDEN]
    bqkv = vec[_ROW_BQKV:_ROW_BQKV + 1, :3 * HIDDEN]
    bo = vec[_ROW_BO:_ROW_BO + 1, :HIDDEN]
    n2g = vec[_ROW_N2G:_ROW_N2G + 1, :HIDDEN]
    n2b = vec[_ROW_N2B:_ROW_N2B + 1, :HIDDEN]
    b1 = vec[_ROW_B1:_ROW_B1 + 1, :FF]
    b2 = vec[_ROW_B2:_ROW_B2 + 1, :HIDDEN]

    # ---- attention block (pre-norm) ----
    h = _layernorm(x, n1g, n1b)                                              # (16, 32)

    # Fused QKV: one (16,32)@(32,96) MXU push; 1/sqrt(head_dim) already folded into the
    # Q columns of wqkv/bqkv at pack time (no in-kernel scale multiply).
    qkv = jnp.dot(h, wqkv_ref[...], preferred_element_type=jnp.float32) + bqkv

    # Stack heads to a leading batch axis via static lane slices: (NUM_HEADS, ROWS, HEAD_DIM).
    def split_heads(m2d):
        return jnp.stack(
            [m2d[:, hd * HEAD_DIM:(hd + 1) * HEAD_DIM] for hd in range(NUM_HEADS)], axis=0
        )

    q3 = split_heads(qkv[:, :HIDDEN])                                        # (4, 16, 8)
    k3 = split_heads(qkv[:, HIDDEN:2 * HIDDEN])                              # (4, 16, 8)
    v3 = split_heads(qkv[:, 2 * HIDDEN:])                                    # (4, 16, 8)

    # Batched scores + block-diagonal batch mask (precomputed constant input).
    scores = jnp.einsum("hqd,hkd->hqk", q3, k3,
                        preferred_element_type=jnp.float32)                  # (4, 16, 16)
    scores = scores + bias_ref[...][None, :, :]
    scores = scores - jnp.max(scores, axis=-1, keepdims=True)
    p = jnp.exp(scores)
    p = p / jnp.sum(p, axis=-1, keepdims=True)      # exact denom (keeps 1e-4 tolerance safe)

    ctx3 = jnp.einsum("hqk,hkd->hqd", p, v3,
                      preferred_element_type=jnp.float32)                    # (4, 16, 8)
    ctx = jnp.concatenate([ctx3[hd] for hd in range(NUM_HEADS)], axis=-1)    # (16, 32)

    attn_out = jnp.dot(ctx, wo_ref[...], preferred_element_type=jnp.float32) + bo
    x1 = x + attn_out                                                        # residual

    # ---- feed-forward block (pre-norm) ----
    h2 = _layernorm(x1, n2g, n2b)
    f = jnp.dot(h2, w1_ref[...], preferred_element_type=jnp.float32) + b1    # (16, 128)
    f = 0.5 * f * (1.0 + lax.erf(f * (1.0 / math.sqrt(2.0))))                # exact GELU
    ff_out = jnp.dot(f, w2_ref[...], preferred_element_type=jnp.float32) + b2

    o_ref[...] = (x1 + ff_out).astype(o_ref.dtype)                           # single lane store


def pack_params(params):
    """One-time parameter prep (do NOT re-run per forward call).

    Returns (wqkv, wo, w1, w2, vec_packed, attn_bias):
      * wqkv/bqkv fused with 1/sqrt(head_dim) pre-folded into the Q columns.
      * All 8 small vectors packed into a single (8, 128) f32 slab (one DMA, one vreg tile).
      * Block-diagonal batch mask precomputed as a (ROWS, ROWS) constant.
    """
    (n1g, n1b, wq, bq, wk, bk, wv, bv, wo, bo, n2g, n2b, w1, b1, w2, b2) = params
    scale = 1.0 / math.sqrt(HEAD_DIM)

    wqkv = jnp.concatenate([wq * scale, wk, wv], axis=1)          # (H, 3H)
    bqkv = jnp.concatenate([bq * scale, bk, bv], axis=1)          # (1, 3H)

    def pad_row(v):
        v = jnp.reshape(v, (-1,)).astype(jnp.float32)
        return jnp.pad(v, (0, FF - v.shape[0]))

    vec_packed = jnp.stack(
        [pad_row(n1g), pad_row(n1b), pad_row(bqkv), pad_row(bo),
         pad_row(n2g), pad_row(n2b), pad_row(b1), pad_row(b2)], axis=0)      # (8, 128)

    # With batch folded into rows, row i may only attend to columns j with i//SEQ == j//SEQ.
    row_b = jnp.arange(ROWS)[:, None] // SEQ
    col_b = jnp.arange(ROWS)[None, :] // SEQ
    attn_bias = jnp.where(row_b == col_b, 0.0, -1e30).astype(jnp.float32)    # (16, 16)

    return (wqkv, wo, w1, w2, vec_packed, attn_bias)


def transformer_layer(x, packed):
    wqkv, wo, w1, w2, vec_packed, attn_bias = packed
    B, S, H = x.shape
    x2d = x.reshape(B * S, H)

    # Advisory cost estimate for XLA's scheduler.
    flops = (
        2 * ROWS * H * (3 * H)                          # fused QKV projection
        + 2 * NUM_HEADS * ROWS * ROWS * HEAD_DIM        # batched scores
        + 2 * NUM_HEADS * ROWS * ROWS * HEAD_DIM        # batched context
        + 2 * ROWS * H * H                              # output projection
        + 2 * ROWS * H * FF                             # ff1
        + 2 * ROWS * FF * H                             # ff2
    )
    transcendentals = (
        NUM_HEADS * ROWS * ROWS                         # exp in softmax
        + ROWS * FF                                     # erf in GELU
        + 2 * ROWS                                      # rsqrt in the two LayerNorms
    )
    param_elems = (H * 3 * H) + (H * H) + (H * FF) + (FF * H) + 8 * FF + ROWS * ROWS
    bytes_accessed = 4 * (2 * ROWS * H + param_elems)

    vmem_spec = pl.BlockSpec(memory_space=pltpu.MemorySpace.VMEM)
    out2d = pl.pallas_call(
        transformer_layer_kernel,
        out_shape=jax.ShapeDtypeStruct((B * S, H), x.dtype),
        in_specs=[vmem_spec] * 7,
        out_specs=vmem_spec,
        cost_estimate=pl.CostEstimate(
            flops=int(flops),
            transcendentals=int(transcendentals),
            bytes_accessed=int(bytes_accessed),
        ),
    )(x2d, attn_bias, vec_packed, wqkv, wo, w1, w2)

    return out2d.reshape(B, S, H)


def init_params(key):
    """Deterministic parameter init matching nn.Linear / nn.LayerNorm shapes.
    Linear weights are stored as (in, out) = W_pytorch.T."""
    ks = jax.random.split(key, 8)
    s = 0.02

    def lin(k, din, dout):
        w = jax.random.normal(k, (din, dout), jnp.float32) * s
        b = jnp.zeros((1, dout), jnp.float32)
        return w, b

    wq, bq = lin(ks[0], HIDDEN, HIDDEN)
    wk, bk = lin(ks[1], HIDDEN, HIDDEN)
    wv, bv = lin(ks[2], HIDDEN, HIDDEN)
    wo, bo = lin(ks[3], HIDDEN, HIDDEN)
    w1, b1 = lin(ks[4], HIDDEN, FF)
    w2, b2 = lin(ks[5], FF, HIDDEN)
    n1g = jnp.ones((1, HIDDEN), jnp.float32)
    n1b = jnp.zeros((1, HIDDEN), jnp.float32)
    n2g = jnp.ones((1, HIDDEN), jnp.float32)
    n2b = jnp.zeros((1, HIDDEN), jnp.float32)
    return (n1g, n1b, wq, bq, wk, bk, wv, bv, wo, bo, n2g, n2b, w1, b1, w2, b2)


def reference(x, params):
    """Pure-JAX reference of the PyTorch forward (eval mode, no mask)."""
    (n1g, n1b, wq, bq, wk, bk, wv, bv, wo, bo, n2g, n2b, w1, b1, w2, b2) = params
    B, S, H = x.shape

    def ln(z, g, b):
        mu = jnp.mean(z, -1, keepdims=True)
        var = jnp.mean((z - mu) ** 2, -1, keepdims=True)
        return (z - mu) / jnp.sqrt(var + EPS) * g + b

    residual = x
    h = ln(x, n1g[0], n1b[0])
    q = (h @ wq + bq[0]).reshape(B, S, NUM_HEADS, HEAD_DIM).transpose(0, 2, 1, 3)
    k = (h @ wk + bk[0]).reshape(B, S, NUM_HEADS, HEAD_DIM).transpose(0, 2, 1, 3)
    v = (h @ wv + bv[0]).reshape(B, S, NUM_HEADS, HEAD_DIM).transpose(0, 2, 1, 3)
    scores = jnp.einsum("bhqd,bhkd->bhqk", q, k) / math.sqrt(HEAD_DIM)
    p = jax.nn.softmax(scores, axis=-1)
    ctx = jnp.einsum("bhqk,bhkd->bhqd", p, v).transpose(0, 2, 1, 3).reshape(B, S, H)
    x1 = residual + (ctx @ wo + bo[0])
    residual = x1
    h2 = ln(x1, n2g[0], n2b[0])
    f = jax.nn.gelu(h2 @ w1 + b1[0], approximate=False)
    return residual + (f @ w2 + b2[0])


if __name__ == "__main__":
    key = jax.random.PRNGKey(0)
    kx, kp = jax.random.split(key)
    x = jax.random.normal(kx, (BATCH, SEQ, HIDDEN), jnp.float32)
    params = init_params(kp)

    # One-time parameter packing, cached outside the per-call forward.
    packed = jax.tree_util.tree_map(jax.block_until_ready, pack_params(params))

    fwd = jax.jit(transformer_layer)
    out = fwd(x, packed)
    out = jax.block_until_ready(out)

    ref = reference(x, params)
    assert out.shape == (BATCH, SEQ, HIDDEN)
    max_err = float(jnp.max(jnp.abs(out - ref)))
    assert jnp.allclose(out, ref, atol=1e-4, rtol=1e-4), max_err

    print("KERNEL_OK")
</pallas_src>

<mosaic_0001>
module attributes {stable_mosaic.version = 11 : i64} {
  func.func @transformer_layer_kernel(%arg0: memref<16x32xf32, #tpu.memory_space<vmem>>, %arg1: memref<16x16xf32, #tpu.memory_space<vmem>>, %arg2: memref<8x128xf32, #tpu.memory_space<vmem>>, %arg3: memref<32x96xf32, #tpu.memory_space<vmem>>, %arg4: memref<32x32xf32, #tpu.memory_space<vmem>>, %arg5: memref<32x128xf32, #tpu.memory_space<vmem>>, %arg6: memref<128x32xf32, #tpu.memory_space<vmem>>, %arg7: memref<16x32xf32, #tpu.memory_space<vmem>>) attributes {dimension_semantics = [], scalar_prefetch = 0 : i64, scratch_operands = 0 : i64, tpu.core_type = #tpu.core_type<tc>} {
    %c0 = arith.constant 0 : index
    %c0_0 = arith.constant 0 : index
    %0 = vector.load %arg0[%c0, %c0_0] : memref<16x32xf32, #tpu.memory_space<vmem>>, vector<16x32xf32>
    %c0_1 = arith.constant 0 : index
    %c0_2 = arith.constant 0 : index
    %1 = vector.load %arg2[%c0_1, %c0_2] : memref<8x128xf32, #tpu.memory_space<vmem>>, vector<8x128xf32>
    %2 = vector.extract_strided_slice %1 {offsets = [0, 0], sizes = [1, 32], strides = [1, 1]} : vector<8x128xf32> to vector<1x32xf32>
    %3 = vector.extract_strided_slice %1 {offsets = [1, 0], sizes = [1, 32], strides = [1, 1]} : vector<8x128xf32> to vector<1x32xf32>
    %4 = vector.extract_strided_slice %1 {offsets = [2, 0], sizes = [1, 96], strides = [1, 1]} : vector<8x128xf32> to vector<1x96xf32>
    %5 = vector.extract_strided_slice %1 {offsets = [3, 0], sizes = [1, 32], strides = [1, 1]} : vector<8x128xf32> to vector<1x32xf32>
    %6 = vector.extract_strided_slice %1 {offsets = [4, 0], sizes = [1, 32], strides = [1, 1]} : vector<8x128xf32> to vector<1x32xf32>
    %7 = vector.extract_strided_slice %1 {offsets = [5, 0], sizes = [1, 32], strides = [1, 1]} : vector<8x128xf32> to vector<1x32xf32>
    %8 = vector.extract_strided_slice %1 {offsets = [6, 0], sizes = [1, 128], strides = [1, 1]} : vector<8x128xf32> to vector<1x128xf32>
    %9 = vector.extract_strided_slice %1 {offsets = [7, 0], sizes = [1, 32], strides = [1, 1]} : vector<8x128xf32> to vector<1x32xf32>
    %cst = arith.constant dense<0.000000e+00> : vector<16xf32>
    %10 = vector.multi_reduction <add>, %0, %cst [1] : vector<16x32xf32> to vector<16xf32>
    %11 = vector.shape_cast %10 : vector<16xf32> to vector<16x1xf32>
    %cst_3 = arith.constant 3.200000e+01 : f32
    %12 = vector.broadcast %cst_3 : f32 to vector<16x1xf32>
    %13 = arith.divf %11, %12 : vector<16x1xf32>
    %14 = vector.broadcast %13 : vector<16x1xf32> to vector<16x32xf32>
    %15 = arith.subf %0, %14 : vector<16x32xf32>
    %16 = arith.mulf %15, %15 : vector<16x32xf32>
    %cst_4 = arith.constant dense<0.000000e+00> : vector<16xf32>
    %17 = vector.multi_reduction <add>, %16, %cst_4 [1] : vector<16x32xf32> to vector<16xf32>
    %18 = vector.shape_cast %17 : vector<16xf32> to vector<16x1xf32>
    %cst_5 = arith.constant 3.200000e+01 : f32
    %19 = vector.broadcast %cst_5 : f32 to vector<16x1xf32>
    %20 = arith.divf %18, %19 : vector<16x1xf32>
    %21 = vector.broadcast %13 : vector<16x1xf32> to vector<16x32xf32>
    %22 = arith.subf %0, %21 : vector<16x32xf32>
    %cst_6 = arith.constant 9.99999974E-6 : f32
    %23 = vector.broadcast %cst_6 : f32 to vector<16x1xf32>
    %24 = arith.addf %20, %23 : vector<16x1xf32>
    %25 = math.rsqrt %24 : vector<16x1xf32>
    %26 = vector.broadcast %25 : vector<16x1xf32> to vector<16x32xf32>
    %27 = arith.mulf %22, %26 : vector<16x32xf32>
    %28 = vector.broadcast %2 : vector<1x32xf32> to vector<16x32xf32>
    %29 = arith.mulf %27, %28 : vector<16x32xf32>
    %30 = vector.broadcast %3 : vector<1x32xf32> to vector<16x32xf32>
    %31 = arith.addf %29, %30 : vector<16x32xf32>
    %c0_7 = arith.constant 0 : index
    %c0_8 = arith.constant 0 : index
    %32 = vector.load %arg3[%c0_7, %c0_8] : memref<32x96xf32, #tpu.memory_space<vmem>>, vector<32x96xf32>
    %cst_9 = arith.constant dense<0.000000e+00> : vector<16x96xf32>
    %33 = tpu.matmul %31, %32, %cst_9 {dimension_numbers = #tpu.dot_dimension_numbers<[1], [0], [0], [1], [0, 0, 1, 1], [], []>} : vector<16x32xf32>, vector<32x96xf32>, vector<16x96xf32> -> vector<16x96xf32>
    %34 = vector.broadcast %4 : vector<1x96xf32> to vector<16x96xf32>
    %35 = arith.addf %33, %34 : vector<16x96xf32>
    %36 = vector.extract_strided_slice %35 {offsets = [0, 0], sizes = [16, 32], strides = [1, 1]} : vector<16x96xf32> to vector<16x32xf32>
    %37 = vector.extract_strided_slice %36 {offsets = [0, 0], sizes = [16, 8], strides = [1, 1]} : vector<16x32xf32> to vector<16x8xf32>
    %38 = vector.extract_strided_slice %36 {offsets = [0, 8], sizes = [16, 8], strides = [1, 1]} : vector<16x32xf32> to vector<16x8xf32>
    %39 = vector.extract_strided_slice %36 {offsets = [0, 16], sizes = [16, 8], strides = [1, 1]} : vector<16x32xf32> to vector<16x8xf32>
    %40 = vector.extract_strided_slice %36 {offsets = [0, 24], sizes = [16, 8], strides = [1, 1]} : vector<16x32xf32> to vector<16x8xf32>
    %41 = vector.shape_cast %37 : vector<16x8xf32> to vector<1x16x8xf32>
    %42 = vector.shape_cast %38 : vector<16x8xf32> to vector<1x16x8xf32>
    %43 = vector.shape_cast %39 : vector<16x8xf32> to vector<1x16x8xf32>
    %44 = vector.shape_cast %40 : vector<16x8xf32> to vector<1x16x8xf32>
    %45 = tpu.concatenate %41, %42, %43, %44 in 0 : vector<1x16x8xf32>, vector<1x16x8xf32>, vector<1x16x8xf32>, vector<1x16x8xf32> -> vector<4x16x8xf32>
    %46 = vector.extract_strided_slice %35 {offsets = [0, 32], sizes = [16, 32], strides = [1, 1]} : vector<16x96xf32> to vector<16x32xf32>
    %47 = vector.extract_strided_slice %46 {offsets = [0, 0], sizes = [16, 8], strides = [1, 1]} : vector<16x32xf32> to vector<16x8xf32>
    %48 = vector.extract_strided_slice %46 {offsets = [0, 8], sizes = [16, 8], strides = [1, 1]} : vector<16x32xf32> to vector<16x8xf32>
    %49 = vector.extract_strided_slice %46 {offsets = [0, 16], sizes = [16, 8], strides = [1, 1]} : vector<16x32xf32> to vector<16x8xf32>
    %50 = vector.extract_strided_slice %46 {offsets = [0, 24], sizes = [16, 8], strides = [1, 1]} : vector<16x32xf32> to vector<16x8xf32>
    %51 = vector.shape_cast %47 : vector<16x8xf32> to vector<1x16x8xf32>
    %52 = vector.shape_cast %48 : vector<16x8xf32> to vector<1x16x8xf32>
    %53 = vector.shape_cast %49 : vector<16x8xf32> to vector<1x16x8xf32>
    %54 = vector.shape_cast %50 : vector<16x8xf32> to vector<1x16x8xf32>
    %55 = tpu.concatenate %51, %52, %53, %54 in 0 : vector<1x16x8xf32>, vector<1x16x8xf32>, vector<1x16x8xf32>, vector<1x16x8xf32> -> vector<4x16x8xf32>
    %56 = vector.extract_strided_slice %35 {offsets = [0, 64], sizes = [16, 32], strides = [1, 1]} : vector<16x96xf32> to vector<16x32xf32>
    %57 = vector.extract_strided_slice %56 {offsets = [0, 0], sizes = [16, 8], strides = [1, 1]} : vector<16x32xf32> to vector<16x8xf32>
    %58 = vector.extract_strided_slice %56 {offsets = [0, 8], sizes = [16, 8], strides = [1, 1]} : vector<16x32xf32> to vector<16x8xf32>
    %59 = vector.extract_strided_slice %56 {offsets = [0, 16], sizes = [16, 8], strides = [1, 1]} : vector<16x32xf32> to vector<16x8xf32>
    %60 = vector.extract_strided_slice %56 {offsets = [0, 24], sizes = [16, 8], strides = [1, 1]} : vector<16x32xf32> to vector<16x8xf32>
    %61 = vector.shape_cast %57 : vector<16x8xf32> to vector<1x16x8xf32>
    %62 = vector.shape_cast %58 : vector<16x8xf32> to vector<1x16x8xf32>
    %63 = vector.shape_cast %59 : vector<16x8xf32> to vector<1x16x8xf32>
    %64 = vector.shape_cast %60 : vector<16x8xf32> to vector<1x16x8xf32>
    %65 = tpu.concatenate %61, %62, %63, %64 in 0 : vector<1x16x8xf32>, vector<1x16x8xf32>, vector<1x16x8xf32>, vector<1x16x8xf32> -> vector<4x16x8xf32>
    "tpu.trace_start"() <{level = 10 : i32, message = "hqd,hkd->hqk"}> : () -> ()
    %cst_10 = arith.constant dense<0.000000e+00> : vector<4x16x16xf32>
    %66 = tpu.matmul %45, %55, %cst_10 {dimension_numbers = #tpu.dot_dimension_numbers<[2], [2], [1], [1], [0, 0, 0, 1, 1, 1], [0], [0]>} : vector<4x16x8xf32>, vector<4x16x8xf32>, vector<4x16x16xf32> -> vector<4x16x16xf32>
    "tpu.trace_stop"() : () -> ()
    %c0_11 = arith.constant 0 : index
    %c0_12 = arith.constant 0 : index
    %67 = vector.load %arg1[%c0_11, %c0_12] : memref<16x16xf32, #tpu.memory_space<vmem>>, vector<16x16xf32>
    %68 = vector.shape_cast %67 : vector<16x16xf32> to vector<1x16x16xf32>
    %69 = vector.broadcast %68 : vector<1x16x16xf32> to vector<4x16x16xf32>
    %70 = arith.addf %66, %69 : vector<4x16x16xf32>
    %cst_13 = arith.constant dense<0xFF800000> : vector<4x16xf32>
    %71 = vector.multi_reduction <maximumf>, %70, %cst_13 [2] : vector<4x16x16xf32> to vector<4x16xf32>
    %72 = vector.shape_cast %71 : vector<4x16xf32> to vector<4x16x1xf32>
    %73 = vector.broadcast %72 : vector<4x16x1xf32> to vector<4x16x16xf32>
    %74 = arith.subf %70, %73 : vector<4x16x16xf32>
    %75 = math.exp %74 : vector<4x16x16xf32>
    %cst_14 = arith.constant dense<0.000000e+00> : vector<4x16xf32>
    %76 = vector.multi_reduction <add>, %75, %cst_14 [2] : vector<4x16x16xf32> to vector<4x16xf32>
    %77 = vector.shape_cast %76 : vector<4x16xf32> to vector<4x16x1xf32>
    %78 = vector.broadcast %77 : vector<4x16x1xf32> to vector<4x16x16xf32>
    %79 = arith.divf %75, %78 : vector<4x16x16xf32>
    "tpu.trace_start"() <{level = 10 : i32, message = "hqk,hkd->hqd"}> : () -> ()
    %cst_15 = arith.constant dense<0.000000e+00> : vector<4x16x8xf32>
    %80 = tpu.matmul %79, %65, %cst_15 {dimension_numbers = #tpu.dot_dimension_numbers<[2], [1], [1], [2], [0, 0, 0, 1, 1, 2], [0], [0]>} : vector<4x16x16xf32>, vector<4x16x8xf32>, vector<4x16x8xf32> -> vector<4x16x8xf32>
    "tpu.trace_stop"() : () -> ()
    %81 = vector.extract_strided_slice %80 {offsets = [0, 0, 0], sizes = [1, 16, 8], strides = [1, 1, 1]} : vector<4x16x8xf32> to vector<1x16x8xf32>
    %82 = vector.shape_cast %81 : vector<1x16x8xf32> to vector<16x8xf32>
    %83 = vector.extract_strided_slice %80 {offsets = [1, 0, 0], sizes = [1, 16, 8], strides = [1, 1, 1]} : vector<4x16x8xf32> to vector<1x16x8xf32>
    %84 = vector.shape_cast %83 : vector<1x16x8xf32> to vector<16x8xf32>
    %85 = vector.extract_strided_slice %80 {offsets = [2, 0, 0], sizes = [1, 16, 8], strides = [1, 1, 1]} : vector<4x16x8xf32> to vector<1x16x8xf32>
    %86 = vector.shape_cast %85 : vector<1x16x8xf32> to vector<16x8xf32>
    %87 = vector.extract_strided_slice %80 {offsets = [3, 0, 0], sizes = [1, 16, 8], strides = [1, 1, 1]} : vector<4x16x8xf32> to vector<1x16x8xf32>
    %88 = vector.shape_cast %87 : vector<1x16x8xf32> to vector<16x8xf32>
    %89 = tpu.concatenate %82, %84, %86, %88 in 1 : vector<16x8xf32>, vector<16x8xf32>, vector<16x8xf32>, vector<16x8xf32> -> vector<16x32xf32>
    %c0_16 = arith.constant 0 : index
    %c0_17 = arith.constant 0 : index
    %90 = vector.load %arg4[%c0_16, %c0_17] : memref<32x32xf32, #tpu.memory_space<vmem>>, vector<32x32xf32>
    %cst_18 = arith.constant dense<0.000000e+00> : vector<16x32xf32>
    %91 = tpu.matmul %89, %90, %cst_18 {dimension_numbers = #tpu.dot_dimension_numbers<[1], [0], [0], [1], [0, 0, 1, 1], [], []>} : vector<16x32xf32>, vector<32x32xf32>, vector<16x32xf32> -> vector<16x32xf32>
    %92 = vector.broadcast %5 : vector<1x32xf32> to vector<16x32xf32>
    %93 = arith.addf %91, %92 : vector<16x32xf32>
    %94 = arith.addf %0, %93 : vector<16x32xf32>
    %cst_19 = arith.constant dense<0.000000e+00> : vector<16xf32>
    %95 = vector.multi_reduction <add>, %94, %cst_19 [1] : vector<16x32xf32> to vector<16xf32>
    %96 = vector.shape_cast %95 : vector<16xf32> to vector<16x1xf32>
    %cst_20 = arith.constant 3.200000e+01 : f32
    %97 = vector.broadcast %cst_20 : f32 to vector<16x1xf32>
    %98 = arith.divf %96, %97 : vector<16x1xf32>
    %99 = vector.broadcast %98 : vector<16x1xf32> to vector<16x32xf32>
    %100 = arith.subf %94, %99 : vector<16x32xf32>
    %101 = arith.mulf %100, %100 : vector<16x32xf32>
    %cst_21 = arith.constant dense<0.000000e+00> : vector<16xf32>
    %102 = vector.multi_reduction <add>, %101, %cst_21 [1] : vector<16x32xf32> to vector<16xf32>
    %103 = vector.shape_cast %102 : vector<16xf32> to vector<16x1xf32>
    %cst_22 = arith.constant 3.200000e+01 : f32
    %104 = vector.broadcast %cst_22 : f32 to vector<16x1xf32>
    %105 = arith.divf %103, %104 : vector<16x1xf32>
    %106 = vector.broadcast %98 : vector<16x1xf32> to vector<16x32xf32>
    %107 = arith.subf %94, %106 : vector<16x32xf32>
    %cst_23 = arith.constant 9.99999974E-6 : f32
    %108 = vector.broadcast %cst_23 : f32 to vector<16x1xf32>
    %109 = arith.addf %105, %108 : vector<16x1xf32>
    %110 = math.rsqrt %109 : vector<16x1xf32>
    %111 = vector.broadcast %110 : vector<16x1xf32> to vector<16x32xf32>
    %112 = arith.mulf %107, %111 : vector<16x32xf32>
    %113 = vector.broadcast %6 : vector<1x32xf32> to vector<16x32xf32>
    %114 = arith.mulf %112, %113 : vector<16x32xf32>
    %115 = vector.broadcast %7 : vector<1x32xf32> to vector<16x32xf32>
    %116 = arith.addf %114, %115 : vector<16x32xf32>
    %c0_24 = arith.constant 0 : index
    %c0_25 = arith.constant 0 : index
    %117 = vector.load %arg5[%c0_24, %c0_25] : memref<32x128xf32, #tpu.memory_space<vmem>>, vector<32x128xf32>
    %cst_26 = arith.constant dense<0.000000e+00> : vector<16x128xf32>
    %118 = tpu.matmul %116, %117, %cst_26 {dimension_numbers = #tpu.dot_dimension_numbers<[1], [0], [0], [1], [0, 0, 1, 1], [], []>} : vector<16x32xf32>, vector<32x128xf32>, vector<16x128xf32> -> vector<16x128xf32>
    %119 = vector.broadcast %8 : vector<1x128xf32> to vector<16x128xf32>
    %120 = arith.addf %118, %119 : vector<16x128xf32>
    %cst_27 = arith.constant 5.000000e-01 : f32
    %121 = vector.broadcast %cst_27 : f32 to vector<16x128xf32>
    %122 = arith.mulf %121, %120 : vector<16x128xf32>
    %cst_28 = arith.constant 0.707106769 : f32
    %123 = vector.broadcast %cst_28 : f32 to vector<16x128xf32>
    %124 = arith.mulf %120, %123 : vector<16x128xf32>
    %125 = math.erf %124 : vector<16x128xf32>
    %cst_29 = arith.constant 1.000000e+00 : f32
    %126 = vector.broadcast %cst_29 : f32 to vector<16x128xf32>
    %127 = arith.addf %126, %125 : vector<16x128xf32>
    %128 = arith.mulf %122, %127 : vector<16x128xf32>
    %c0_30 = arith.constant 0 : index
    %c0_31 = arith.constant 0 : index
    %129 = vector.load %arg6[%c0_30, %c0_31] : memref<128x32xf32, #tpu.memory_space<vmem>>, vector<128x32xf32>
    %cst_32 = arith.constant dense<0.000000e+00> : vector<16x32xf32>
    %130 = tpu.matmul %128, %129, %cst_32 {dimension_numbers = #tpu.dot_dimension_numbers<[1], [0], [0], [1], [0, 0, 1, 1], [], []>} : vector<16x128xf32>, vector<128x32xf32>, vector<16x32xf32> -> vector<16x32xf32>
    %131 = vector.broadcast %9 : vector<1x32xf32> to vector<16x32xf32>
    %132 = arith.addf %130, %131 : vector<16x32xf32>
    %133 = arith.addf %94, %132 : vector<16x32xf32>
    %c0_33 = arith.constant 0 : index
    %c0_34 = arith.constant 0 : index
    %134 = vector.load %arg7[%c0_33, %c0_34] : memref<16x32xf32, #tpu.memory_space<vmem>>, vector<16x32xf32>
    tpu.vector_store %arg7[%c0_33, %c0_34], %133 {strides = array<i32>} : memref<16x32xf32, #tpu.memory_space<vmem>>, vector<16x32xf32>,
    return
  }
}

</mosaic_0001>

<bundles_post_ra>
// kernel: transformer_layer.1
= control target key start
LH: loop header
LB: loop body
LE: loop exit
PB: predicated region body
PF: predicated region fallthrough
CT: control target
= control target key end

     0   :  { %vm30_vm0 = vcmask 261120   ;;  %s1966_s0 = inlined_call_operand.vmem [shape: f32[16,32], index: 0, kind: input, shape index: {}]   ;;  %s1967_s1 = inlined_call_operand.vmem [shape: f32[16,16], index: 1, kind: input, shape index: {}]   ;;  %s1968_s2 = inlined_call_operand.vmem [shape: f32[8,128], index: 2, kind: input, shape index: {}]   ;;  %s1969_s3 = inlined_call_operand.vmem [shape: f32[32,96], index: 3, kind: input, shape index: {}]   ;;  %s1970_s4 = inlined_call_operand.vmem [shape: f32[32,32], index: 4, kind: input, shape index: {}]   ;;  %s1971_s5 = inlined_call_operand.vmem [shape: f32[32,128], index: 5, kind: input, shape index: {}]   ;;  %s1972_s6 = inlined_call_operand.vmem [shape: f32[128,32], index: 6, kind: input, shape index: {}]   ;;  %s1973_s7 = inlined_call_operand.hbm [shape: f32[16,32], index: 7, kind: output, shape index: {}]  }
   0x1   :  { %v1686_v0 = vld [vmem:[%s1966_s0] sm:$0xff]  ;;  %v1691_v1 = vld [vmem:[%s1966_s0 + $0x8] sm:$0xff] }
   0x2   :  { %12 = vsyncpa [#allocation3], 0  ;;  %v31_v2 = vsel %vm30_vm0, %v1686_v0, 0.0  ;;  %v34_v3 = vsel %vm30_vm0, %v1691_v1, 0.0  ;;  %v73_v14 = vld [vmem:[%s1969_s3 + $0x18] sm:$0xff]  ;;  %v72_v15 = vld [vmem:[%s1969_s3 + $0x10] sm:$0xff]  ;;  %v58_v23 = vlaneseq }
   0x3   :  { %32 = vadd.xlane.f32.xlu0 %v31_v2  ;;  %1433 = vmatprep.subr.mxu1 %v73_v14  ;;  %v71_v16 = vld [vmem:[%s1969_s3 + $0x8] sm:$0xff]  ;;  %v70_v17 = vld [vmem:[%s1969_s3] sm:$0xff]  ;;  %vm179_vm1 = vcmask 64512   ;;  %s1634_s3 = smov 112   ;;  %s1635_s14 = smov 96   ;;  %vm524_vm2 = vcmask 130048  }
   0x4   :  { %1434 = vmatpush3.msra.mxu1 %v73_v14  ;;  %v1713_v25 = vshrl.u32 %v58_v23, 7  ;;  %v1719_v27 = vld [vmem:[%s1968_s2] sm:$0xff]  ;;  %s1633_s2 = smov 120   ;;  %s1636_s15 = smov 104   ;;  %v174_v59 = vld [vmem:[%s1967_s1 + $0x8] sm:$0xff]  ;;  %vm989_vm3 = vcmask 195584  }
   0x5   :  { %1435 = vmatprep.subr.mxu1 %v72_v15  ;;  %v173_v61 = vld [vmem:[%s1967_s1] sm:$0xff]  ;;  %s1637_s1 = smov 64   ;;  %s1638_s20 = smov 8  }
   0x6   :  { %1436 = vmatpush3.msra.mxu1 %v72_v15  ;;  %v60_v26 = vsub.s32 0, %v1713_v25  ;;  %v66_v28 = vsub.s32 1, %v1713_v25  ;;  %v76_v39 = vsub.s32 2, %v1713_v25  ;;  %s1639_s28 = smov 16   ;;  %s1640_s29 = smov 24  }
   0x7   :  { %35 = vadd.xlane.f32.xlu0 %v34_v3  ;;  %1437 = vmatprep.subr.mxu1 %v71_v16 }
   0x8   :  { %1438 = vmatpush3.msra.mxu1 %v71_v16  ;;  %v61_v29 = vrot.slane %v1719_v27, %v60_v26  ;;  %v67_v32 = vrot.slane %v1719_v27, %v66_v28  ;;  %v77_v40 = vrot.slane %v1719_v27, %v76_v39 }
   0x9   :  { %1439 = vmatprep.subr.mxu1 %v70_v17 }
   0xa   :  { %1440 = vmatpush3.msra.mxu1 %v70_v17 }
  0x8c   :  { %v33_v4 = vpop.xlane.xlu0 %32 }
  0x8d   :  { %v38_v5 = vmul.f32 0.03125, %v33_v4 }
  0x8f   :  { %v40_v6 = vsub.f32 %v1686_v0, %v38_v5 }
  0x90   :  { %v36_v7 = vpop.xlane.xlu0 %35 }
  0x91   :  { %v39_v8 = vmul.f32 0.03125, %v36_v7  ;;  %v42_v9 = vmul.f32 %v40_v6, %v40_v6 }
  0x93   :  { %v41_v10 = vsub.f32 %v1691_v1, %v39_v8  ;;  %v44_v11 = vsel %vm30_vm0, %v42_v9, 0.0 }
  0x94   :  { %45 = vadd.xlane.f32.xlu1 %v44_v11 }
  0x95   :  { %v43_v12 = vmul.f32 %v41_v10, %v41_v10 }
  0x97   :  { %v47_v13 = vsel %vm30_vm0, %v43_v12, 0.0 }
  0x98   :  { %48 = vadd.xlane.f32.xlu1 %v47_v13 }
 0x11d   :  { %v46_v18 = vpop.xlane.xlu1 %45 }
 0x11e   :  { %v50_v19 = vmul.f32 0.03125, %v46_v18 }
 0x120   :  { %v52_v20 = vadd.f32 1e-05, %v50_v19 }
 0x121   :  { %v49_v21 = vpop.xlane.xlu1 %48 }
 0x122   :  { %1567 = vrsqrt.f32 %v52_v20  ;;  %v51_v22 = vmul.f32 0.03125, %v49_v21 }
 0x124   :  { %v53_v24 = vadd.f32 1e-05, %v51_v22 }
 0x126   :  { %1569 = vrsqrt.f32 %v53_v24 }
 0x12f   :  { %v1568_v30 = vpop.eup %1567 }
 0x130   :  { %v56_v31 = vmul.f32 %v1568_v30, %v40_v6 }
 0x132   :  { %v62_v33 = vmul.f32 %v61_v29, %v56_v31 }
 0x133   :  { %v1570_v34 = vpop.eup %1569 }
 0x134   :  { %v57_v35 = vmul.f32 %v1570_v34, %v41_v10  ;;  %v68_v36 = vadd.f32 %v67_v32, %v62_v33 }
 0x136   :  { %v63_v37 = vmul.f32 %v61_v29, %v57_v35  ;;  %1441 = vmatprep.mubr.msk.f32.mxu1 %vm30_vm0, %v68_v36 }
 0x138   :  { %v69_v38 = vadd.f32 %v67_v32, %v63_v37 }
 0x13a   :  { %1442 = vmatmul.mubr.msk.f32.vlgmr.msra.gmra.mxu1 %vm30_vm0, %v69_v38 }
 0x1fa   :  { %v1443_v41 = vpop.f32.mrf.mxu1 }
 0x1fb   :  { %v1728_v42 = vadd.f32 %v1443_v41, %v77_v40 }
 0x1fc   :  { %v150_v43 = vpop.f32.mrf.mxu1 }
 0x1fd   :  { %v1730_v44 = vadd.f32 %v150_v43, %v77_v40  ;;  %163 = vrot.lane.b32.xlu0 %v1728_v42, %s1633_s2 }
 0x1ff   :  { %161 = vrot.lane.b32.xlu1 %v1730_v44, %s1633_s2  ;;  %1448 = vmatprep.mubr.msk.f32.mxu1 %vm179_vm1, %v1730_v44 }
 0x201   :  { %165 = vrot.lane.b32.xlu0 %v1730_v44, %s1634_s3 }
 0x203   :  { %167 = vrot.lane.b32.xlu1 %v1728_v42, %s1634_s3 }
 0x205   :  { %177 = vrot.lane.b32.xlu0 %v1728_v42, %s1635_s14 }
 0x207   :  { %171 = vrot.lane.b32.xlu1 %v1728_v42, %s1636_s15 }
 0x20b   :  { %169 = vrot.lane.b32.xlu1 %v1730_v44, %s1636_s15 }
 0x20f   :  { %175 = vrot.lane.b32.xlu1 %v1730_v44, %s1635_s14 }
 0x26f   :  { %v1742_v45 = vpop.permute.xlu0 %163 }
 0x270   :  { %265 = vrot.lane.b32.xlu0 %v1742_v45, %s1635_s14 }
 0x271   :  { %v1745_v46 = vpop.permute.xlu1 %161 }
 0x272   :  { %263 = vrot.lane.b32.xlu1 %v1745_v46, %s1635_s14 }
 0x273   :  { %v1748_v47 = vpop.permute.xlu0 %165 }
 0x275   :  { %v1750_v48 = vpop.permute.xlu1 %167 }
 0x276   :  { %352 = vrot.lane.b32.xlu0 %v1750_v48, %s1635_s14 }
 0x277   :  { %v178_v49 = vpop.permute.xlu0 %177 }
 0x278   :  { %1444 = vmatprep.subr.msk.mxu1 %vm179_vm1, %v178_v49 }
 0x279   :  { %1445 = vmatpush3.xpose.msk.msra.mxu1 %vm179_vm1, %v178_v49  ;;  %v1755_v50 = vpop.permute.xlu1 %171 }
 0x27a   :  { %350 = vrot.lane.b32.xlu0 %v1748_v47, %s1635_s14  ;;  %439 = vrot.lane.b32.xlu1 %v1755_v50, %s1635_s14 }
 0x27d   :  { %v1759_v51 = vpop.permute.xlu1 %169 }
 0x27e   :  { %1469 = vmatprep.mubr.msk.f32.mxu0 %vm179_vm1, %v1759_v51  ;;  %437 = vrot.lane.b32.xlu1 %v1759_v51, %s1635_s14 }
 0x281   :  { %v176_v52 = vpop.permute.xlu1 %175 }
 0x282   :  { %1446 = vmatprep.subr.msk.mxu1 %vm179_vm1, %v176_v52 }
 0x283   :  { %1447 = vmatpush3.xpose.msk.msra.mxu1 %vm179_vm1, %v176_v52 }
 0x286   :  { %1449 = vmatmul.mubr.msk.f32.vlgmr.msra.gmra.mxu1 %vm179_vm1, %v1728_v42 }
 0x287   :  { %1455 = vmatprep.mubr.msk.f32.mxu1 %vm179_vm1, %v1745_v46 }
 0x2e2   :  { %v266_v53 = vpop.permute.xlu0 %265 }
 0x2e3   :  { %1451 = vmatprep.subr.msk.mxu1 %vm179_vm1, %v266_v53 }
 0x2e4   :  { %v264_v54 = vpop.permute.xlu1 %263  ;;  %1452 = vmatpush3.xpose.msk.msra.mxu1 %vm179_vm1, %v266_v53 }
 0x2e5   :  { %1453 = vmatprep.subr.msk.mxu1 %vm179_vm1, %v264_v54 }
 0x2e8   :  { %v353_v55 = vpop.permute.xlu0 %352  ;;  %1454 = vmatpush3.xpose.msk.msra.mxu1 %vm179_vm1, %v264_v54 }
 0x2e9   :  { %1458 = vmatprep.subr.msk.mxu1 %vm179_vm1, %v353_v55 }
 0x2eb   :  { %1456 = vmatmul.mubr.msk.f32.vlgmr.msra.gmra.mxu1 %vm179_vm1, %v1742_v45 }
 0x2ec   :  { %v351_v56 = vpop.permute.xlu0 %350  ;;  %v440_v57 = vpop.permute.xlu1 %439  ;;  %1459 = vmatpush3.xpose.msk.msra.mxu1 %vm179_vm1, %v353_v55  ;;  %1462 = vmatprep.mubr.msk.f32.mxu1 %vm179_vm1, %v1748_v47 }
 0x2ed   :  { %1460 = vmatprep.subr.msk.mxu1 %vm179_vm1, %v351_v56  ;;  %1465 = vmatprep.subr.msk.mxu0 %vm179_vm1, %v440_v57 }
 0x2ee   :  { %1466 = vmatpush3.xpose.msk.msra.mxu0 %vm179_vm1, %v440_v57 }
 0x2f0   :  { %v438_v58 = vpop.permute.xlu1 %437  ;;  %1461 = vmatpush3.xpose.msk.msra.mxu1 %vm179_vm1, %v351_v56 }
 0x2f1   :  { %1467 = vmatprep.subr.msk.mxu0 %vm179_vm1, %v438_v58 }
 0x2f2   :  { %1468 = vmatpush3.xpose.msk.msra.mxu0 %vm179_vm1, %v438_v58 }
 0x2f3   :  { %1463 = vmatmul.mubr.msk.f32.vlgmr.msra.gmra.mxu1 %vm179_vm1, %v1750_v48 }
 0x2f5   :  { %1470 = vmatmul.mubr.msk.f32.vlgmr.msra.gmra.mxu0 %vm179_vm1, %v1755_v50 }
 0x346   :  { %v1450_v60 = vpop.f32.mrf.mxu1 }
 0x347   :  { %v260_v62 = vadd.f32 %v1450_v60, %v174_v59 }
 0x348   :  { %v254_v63 = vpop.f32.mrf.mxu1 }
 0x349   :  { %v255_v2 = vadd.f32 %v254_v63, %v173_v61  ;;  %v528_v3 = vsel %vm524_vm2, %v260_v62, -inf }
 0x34a   :  { %529 = vmax.xlane.f32.xlu1 %v528_v3 }
 0x34b   :  { %v525_v4 = vsel %vm524_vm2, %v255_v2, -inf }
 0x34c   :  { %526 = vmax.xlane.f32.xlu0 %v525_v4 }
 0x3ab   :  { %v1457_v5 = vpop.f32.mrf.mxu1 }
 0x3ac   :  { %v347_v6 = vadd.f32 %v1457_v5, %v174_v59 }
 0x3ad   :  { %v341_v7 = vpop.f32.mrf.mxu1 }
 0x3ae   :  { %v342_v8 = vadd.f32 %v341_v7, %v173_v61  ;;  %v534_v9 = vsel %vm524_vm2, %v347_v6, -inf }
 0x3af   :  { %535 = vmax.xlane.f32.xlu0 %v534_v9 }
 0x3b0   :  { %v531_v10 = vsel %vm524_vm2, %v342_v8, -inf }
 0x3b3   :  { %v1464_v11 = vpop.f32.mrf.mxu1  ;;  %532 = vmax.xlane.f32.xlu0 %v531_v10 }
 0x3b4   :  { %v434_v12 = vadd.f32 %v1464_v11, %v174_v59 }
 0x3b5   :  { %v428_v13 = vpop.f32.mrf.mxu1  ;;  %v1471_v14 = vpop.f32.mrf.mxu0 }
 0x3b6   :  { %v429_v15 = vadd.f32 %v428_v13, %v173_v61  ;;  %v521_v16 = vadd.f32 %v1471_v14, %v174_v59  ;;  %v540_v17 = vsel %vm524_vm2, %v434_v12, -inf }
 0x3b7   :  { %v515_v18 = vpop.f32.mrf.mxu0  ;;  %541 = vmax.xlane.f32.xlu1 %v540_v17 }
 0x3b8   :  { %v516_v19 = vadd.f32 %v515_v18, %v173_v61  ;;  %v537_v20 = vsel %vm524_vm2, %v429_v15, -inf  ;;  %v546_v21 = vsel %vm524_vm2, %v521_v16, -inf }
 0x3b9   :  { %538 = vmax.xlane.f32.xlu0 %v537_v20 }
 0x3ba   :  { %v543_v22 = vsel %vm524_vm2, %v516_v19, -inf }
 0x3bb   :  { %547 = vmax.xlane.f32.xlu1 %v546_v21 }
 0x3bd   :  { %544 = vmax.xlane.f32.xlu0 %v543_v22 }
 0x3cc   :  { %613 = vrot.lane.b32.xlu1 %v1730_v44, %s1637_s1 }
 0x3d0   :  { %702 = vrot.lane.b32.xlu1 %v1742_v45, %s1637_s1 }
 0x3d3   :  { %615 = vrot.lane.b32.xlu0 %v1728_v42, %s1637_s1  ;;  %v530_v26 = vpop.xlane.xlu1 %529 }
 0x3d4   :  { %700 = vrot.lane.b32.xlu1 %v1745_v46, %s1637_s1  ;;  %v550_v29 = vsub.f32 %v260_v62, %v530_v26 }
 0x3d5   :  { %v527_v23 = vpop.xlane.xlu0 %526 }
 0x3d6   :  { %v549_v24 = vsub.f32 %v255_v2, %v527_v23  ;;  %v559_v30 = vmul.f32 1.442695, %v550_v29 }
 0x3d7   :  { %789 = vrot.lane.b32.xlu0 %v1750_v48, %s1637_s1 }
 0x3d8   :  { %876 = vrot.lane.b32.xlu1 %v1755_v50, %s1637_s1  ;;  %v557_v28 = vmul.f32 1.442695, %v549_v24 }
 0x3da   :  { %1571 = vpow2.f32 %v557_v28 }
 0x3db   :  { %1573 = vpow2.f32 %v559_v30 }
 0x3e7   :  { %v1816_v31 = vpop.eup %1571 }
 0x3e8   :  { %v573_v32 = vsel %vm524_vm2, %v1816_v31, 0.0  ;;  %v1820_v33 = vpop.eup %1573 }
 0x3e9   :  { %v576_v34 = vsel %vm524_vm2, %v1820_v33, 0.0 }
 0x3f6   :  { %574 = vadd.xlane.f32.xlu0 %v573_v32 }
 0x3fc   :  { %577 = vadd.xlane.f32.xlu1 %v576_v34 }
 0x438   :  { %v536_v35 = vpop.xlane.xlu0 %535 }
 0x439   :  { %v552_v36 = vsub.f32 %v347_v6, %v536_v35 }
 0x43b   :  { %v563_v37 = vmul.f32 1.442695, %v552_v36 }
 0x43c   :  { %v533_v38 = vpop.xlane.xlu0 %532 }
 0x43d   :  { %1575 = vpow2.f32 %v563_v37  ;;  %v551_v39 = vsub.f32 %v342_v8, %v533_v38 }
 0x43f   :  { %v561_v40 = vmul.f32 1.442695, %v551_v39 }
 0x440   :  { %v542_v41 = vpop.xlane.xlu1 %541 }
 0x441   :  { %1577 = vpow2.f32 %v561_v40  ;;  %v554_v42 = vsub.f32 %v434_v12, %v542_v41  ;;  %v995_v41 = vld [vmem:[%s1970_s4 + $0x18] sm:$0xff] }
 0x442   :  { %v539_v43 = vpop.xlane.xlu0 %538 }
 0x443   :  { %v553_v45 = vsub.f32 %v429_v15, %v539_v43  ;;  %v567_v48 = vmul.f32 1.442695, %v554_v42  ;;  %v994_v42 = vld [vmem:[%s1970_s4 + $0x10] sm:$0xff]  ;;  %v993_v43 = vld [vmem:[%s1970_s4 + $0x8] sm:$0xff] }
 0x444   :  { %v548_v44 = vpop.xlane.xlu1 %547 }
 0x445   :  { %v556_v46 = vsub.f32 %v521_v16, %v548_v44  ;;  %v565_v54 = vmul.f32 1.442695, %v553_v45  ;;  %v992_v44 = vld [vmem:[%s1970_s4] sm:$0xff] }
 0x446   :  { %v545_v49 = vpop.xlane.xlu0 %544 }
 0x447   :  { %v571_v50 = vmul.f32 1.442695, %v556_v46  ;;  %v555_v52 = vsub.f32 %v516_v19, %v545_v49 }
 0x448   :  { %v614_v53 = vpop.permute.xlu1 %613 }
 0x449   :  { %1579 = vpow2.f32 %v571_v50  ;;  %v569_v55 = vmul.f32 1.442695, %v555_v52 }
 0x44a   :  { %v1824_v56 = vpop.eup %1575  ;;  %1581 = vpow2.f32 %v567_v48  ;;  %v616_v57 = vpop.permute.xlu0 %615 }
 0x44b   :  { %1583 = vpow2.f32 %v569_v55  ;;  %1472 = vmatprep.subr.mxu1 %v616_v57  ;;  %v582_v58 = vsel %vm524_vm2, %v1824_v56, 0.0 }
 0x44c   :  { %583 = vadd.xlane.f32.xlu1 %v582_v58  ;;  %1473 = vmatpush3.msra.mxu1 %v616_v57  ;;  %1585 = vpow2.f32 %v565_v54  ;;  %v703_v60 = vpop.permute.xlu1 %702 }
 0x44d   :  { %1474 = vmatprep.subr.mxu1 %v614_v53 }
 0x44e   :  { %v1578_v59 = vpop.eup %1577  ;;  %1475 = vmatpush3.msra.mxu1 %v614_v53  ;;  %v790_v61 = vpop.permute.xlu0 %789 }
 0x44f   :  { %1479 = vmatprep.subr.mxu1 %v703_v60  ;;  %1486 = vmatprep.subr.mxu0 %v790_v61  ;;  %v579_v62 = vsel %vm524_vm2, %v1578_v59, 0.0 }
 0x450   :  { %580 = vadd.xlane.f32.xlu0 %v579_v62  ;;  %1487 = vmatpush3.msra.mxu0 %v790_v61  ;;  %v701_v9 = vpop.permute.xlu1 %700 }
 0x454   :  { %v877_v11 = vpop.permute.xlu1 %876 }
 0x456   :  { %v1580_v63 = vpop.eup %1579 }
 0x457   :  { %v1829_v2 = vpop.eup %1581  ;;  %v594_v3 = vsel %vm524_vm2, %v1580_v63, 0.0 }
 0x458   :  { %v1584_v4 = vpop.eup %1583  ;;  %595 = vadd.xlane.f32.xlu1 %v594_v3  ;;  %v588_v7 = vsel %vm524_vm2, %v1829_v2, 0.0 }
 0x459   :  { %v591_v5 = vsel %vm524_vm2, %v1584_v4, 0.0  ;;  %v1586_v6 = vpop.eup %1585 }
 0x45a   :  { %592 = vadd.xlane.f32.xlu0 %v591_v5  ;;  %v585_v8 = vsel %vm524_vm2, %v1586_v6, 0.0 }
 0x45c   :  { %589 = vadd.xlane.f32.xlu1 %v588_v7 }
 0x45e   :  { %586 = vadd.xlane.f32.xlu0 %v585_v8 }
 0x46d   :  { %874 = vrot.lane.b32.xlu1 %v1759_v51, %s1637_s1 }
 0x474   :  { %787 = vrot.lane.b32.xlu0 %v1748_v47, %s1637_s1 }
 0x47f   :  { %v575_v10 = vpop.xlane.xlu0 %574 }
 0x480   :  { %1587 = vrcp.f32 %v575_v10 }
 0x485   :  { %v578_v12 = vpop.xlane.xlu1 %577 }
 0x486   :  { %1589 = vrcp.f32 %v578_v12 }
 0x48d   :  { %v1588_v13 = vpop.eup %1587 }
 0x48e   :  { %v598_v14 = vmul.f32 %v1588_v13, %v1816_v31 }
 0x490   :  { %1476 = vmatprep.mubr.msk.f32.mxu1 %vm524_vm2, %v598_v14 }
 0x493   :  { %v1590_v15 = vpop.eup %1589 }
 0x494   :  { %v600_v16 = vmul.f32 %v1590_v15, %v1820_v33 }
 0x496   :  { %1477 = vmatmul.mubr.msk.f32.vlgmr.msra.gmra.mxu1 %vm524_vm2, %v600_v16 }
 0x497   :  { %1480 = vmatpush3.msra.mxu1 %v703_v60 }
 0x498   :  { %1481 = vmatprep.subr.mxu1 %v701_v9 }
 0x499   :  { %1482 = vmatpush3.msra.mxu1 %v701_v9 }
 0x49a   :  { %1493 = vmatprep.subr.mxu1 %v877_v11 }
 0x4d5   :  { %v584_v47 = vpop.xlane.xlu1 %583 }
 0x4d6   :  { %1591 = vrcp.f32 %v584_v47 }
 0x4d9   :  { %v581_v51 = vpop.xlane.xlu0 %580 }
 0x4da   :  { %1593 = vrcp.f32 %v581_v51 }
 0x4e1   :  { %v596_v17 = vpop.xlane.xlu1 %595 }
 0x4e2   :  { %1595 = vrcp.f32 %v596_v17  ;;  %v1124_v17 = vld [vmem:[%s1971_s5 + $0x18] sm:$0xff] }
 0x4e3   :  { %v593_v18 = vpop.xlane.xlu0 %592  ;;  %v1592_v20 = vpop.eup %1591 }
 0x4e4   :  { %1597 = vrcp.f32 %v593_v18  ;;  %v604_v24 = vmul.f32 %v1592_v20, %v1824_v56  ;;  %v1123_v18 = vld [vmem:[%s1971_s5 + $0x10] sm:$0xff]  ;;  %v1121_v20 = vld [vmem:[%s1971_s5] sm:$0xff] }
 0x4e5   :  { %v590_v19 = vpop.xlane.xlu1 %589 }
 0x4e6   :  { %1599 = vrcp.f32 %v590_v19  ;;  %v1122_v19 = vld [vmem:[%s1971_s5 + $0x8] sm:$0xff] }
 0x4e7   :  { %v1594_v21 = vpop.eup %1593  ;;  %v587_v22 = vpop.xlane.xlu0 %586 }
 0x4e8   :  { %1601 = vrcp.f32 %v587_v22  ;;  %v602_v23 = vmul.f32 %v1594_v21, %v1578_v59  ;;  %v1235_v21 = vld [vmem:[%s1972_s6 + $0x78] sm:$0xff]  ;;  %v1234_v22 = vld [vmem:[%s1972_s6 + $0x70] sm:$0xff] }
 0x4e9   :  { %v875_v28 = vpop.permute.xlu1 %874 }
 0x4ea   :  { %1483 = vmatprep.mubr.msk.f32.mxu1 %vm524_vm2, %v602_v23  ;;  %v1233_v23 = vld [vmem:[%s1972_s6 + $0x68] sm:$0xff] }
 0x4eb   :  { %1484 = vmatmul.mubr.msk.f32.vlgmr.msra.gmra.mxu1 %vm524_vm2, %v604_v24  ;;  %v788_v26 = vpop.permute.xlu0 %787 }
 0x4ec   :  { %1494 = vmatpush3.msra.mxu1 %v877_v11  ;;  %1488 = vmatprep.subr.mxu0 %v788_v26 }
 0x4ed   :  { %1495 = vmatprep.subr.mxu1 %v875_v28  ;;  %1489 = vmatpush3.msra.mxu0 %v788_v26 }
 0x4ee   :  { %1496 = vmatpush3.msra.mxu1 %v875_v28  ;;  %1500 = vmatprep.subr.mxu0 %v995_v41 }
 0x4ef   :  { %v1596_v29 = vpop.eup %1595  ;;  %1511 = vmatprep.subr.mxu1 %v1124_v17 }
 0x4f0   :  { %v612_v32 = vmul.f32 %v1596_v29, %v1580_v63  ;;  %v998_v63 = vsub.s32 3, %v1713_v25 }
 0x4f1   :  { %v1598_v30 = vpop.eup %1597 }
 0x4f2   :  { %v610_v31 = vmul.f32 %v1598_v30, %v1584_v4 }
 0x4f3   :  { %v1600_v33 = vpop.eup %1599 }
 0x4f4   :  { %1497 = vmatprep.mubr.msk.f32.mxu1 %vm524_vm2, %v610_v31  ;;  %v608_v36 = vmul.f32 %v1600_v33, %v1829_v2  ;;  %v999_v2 = vrot.slane %v1719_v27, %v998_v63  ;;  %v1117_v33 = vsub.s32 5, %v1713_v25 }
 0x4f5   :  { %v1602_v34 = vpop.eup %1601  ;;  %1498 = vmatmul.mubr.msk.f32.vlgmr.msra.gmra.mxu1 %vm524_vm2, %v612_v32  ;;  %v1111_v32 = vsub.s32 4, %v1713_v25 }
 0x4f6   :  { %v606_v35 = vmul.f32 %v1602_v34, %v1586_v6  ;;  %1512 = vmatpush3.msra.mxu1 %v1124_v17 }
 0x4f7   :  { %1513 = vmatprep.subr.mxu1 %v1123_v18  ;;  %v1112_v34 = vrot.slane %v1719_v27, %v1111_v32 }
 0x4f8   :  { %1490 = vmatprep.mubr.msk.f32.mxu0 %vm524_vm2, %v606_v35  ;;  %1514 = vmatpush3.msra.mxu1 %v1123_v18 }
 0x4f9   :  { %1491 = vmatmul.mubr.msk.f32.vlgmr.msra.gmra.mxu0 %vm524_vm2, %v608_v36  ;;  %1515 = vmatprep.subr.mxu1 %v1122_v19 }
 0x4fa   :  { %1501 = vmatpush3.msra.mxu0 %v995_v41  ;;  %1516 = vmatpush3.msra.mxu1 %v1122_v19 }
 0x4fb   :  { %1502 = vmatprep.subr.mxu0 %v994_v42  ;;  %1517 = vmatprep.subr.mxu1 %v1121_v20 }
 0x4fc   :  { %1503 = vmatpush3.msra.mxu0 %v994_v42  ;;  %1518 = vmatpush3.msra.mxu1 %v1121_v20 }
 0x4fd   :  { %1504 = vmatprep.subr.mxu0 %v993_v43 }
 0x4fe   :  { %1505 = vmatpush3.msra.mxu0 %v993_v43 }
 0x4ff   :  { %1506 = vmatprep.subr.mxu0 %v992_v44 }
 0x500   :  { %1507 = vmatpush3.msra.mxu0 %v992_v44  ;;  %v1232_v44 = vld [vmem:[%s1972_s6 + $0x60] sm:$0xff] }
 0x501   :  { %1522 = vmatprep.subr.mxu0 %v1235_v21 }
 0x556   :  { %v1478_v37 = vpop.f32.mrf.mxu1 }
 0x558   :  { %v691_v38 = vpop.f32.mrf.mxu1 }
 0x5ab   :  { %v1485_v39 = vpop.f32.mrf.mxu1 }
 0x5ac   :  { %965 = vrot.lane.b32.xlu1 %v1485_v39, %s1638_s20 }
 0x5ad   :  { %v778_v40 = vpop.f32.mrf.mxu1 }
 0x5ae   :  { %963 = vrot.lane.b32.xlu0 %v778_v40, %s1638_s20 }
 0x5b5   :  { %v1499_v46 = vpop.f32.mrf.mxu1 }
 0x5b7   :  { %v952_v49 = vpop.f32.mrf.mxu1 }
 0x5b9   :  { %v1492_v45 = vpop.f32.mrf.mxu0 }
 0x5ba   :  { %973 = vrot.lane.b32.xlu1 %v1492_v45, %s1639_s28  ;;  %v1231_v45 = vld [vmem:[%s1972_s6 + $0x58] sm:$0xff] }
 0x5bb   :  { %v865_v48 = vpop.f32.mrf.mxu0 }
 0x5bc   :  { %971 = vrot.lane.b32.xlu0 %v865_v48, %s1639_s28  ;;  %v1229_v48 = vld [vmem:[%s1972_s6 + $0x48] sm:$0xff] }
 0x5be   :  { %981 = vrot.lane.b32.xlu1 %v1499_v46, %s1640_s29  ;;  %v1230_v46 = vld [vmem:[%s1972_s6 + $0x50] sm:$0xff] }
 0x5c0   :  { %979 = vrot.lane.b32.xlu0 %v952_v49, %s1640_s29  ;;  %v1228_v49 = vld [vmem:[%s1972_s6 + $0x40] sm:$0xff] }
 0x61e   :  { %v966_v50 = vpop.permute.xlu1 %965 }
 0x61f   :  { %v986_v57 = vsel %vm179_vm1, %v1478_v37, %v966_v50  ;;  %v1118_v37 = vrot.slane %v1719_v27, %v1117_v33  ;;  %v1227_v50 = vld [vmem:[%s1972_s6 + $0x38] sm:$0xff] }
 0x620   :  { %v964_v52 = vpop.permute.xlu0 %963 }
 0x621   :  { %v985_v55 = vsel %vm179_vm1, %v691_v38, %v964_v52  ;;  %v1226_v52 = vld [vmem:[%s1972_s6 + $0x30] sm:$0xff] }
 0x62c   :  { %v974_v53 = vpop.permute.xlu1 %973 }
 0x62d   :  { %v988_v60 = vsel %vm524_vm2, %v986_v57, %v974_v53  ;;  %v1225_v53 = vld [vmem:[%s1972_s6 + $0x28] sm:$0xff] }
 0x62e   :  { %v972_v54 = vpop.permute.xlu0 %971  ;;  %v1221_v57 = vld [vmem:[%s1972_s6 + $0x8] sm:$0xff] }
 0x62f   :  { %v987_v58 = vsel %vm524_vm2, %v985_v55, %v972_v54  ;;  %v1224_v54 = vld [vmem:[%s1972_s6 + $0x20] sm:$0xff]  ;;  %v1223_v55 = vld [vmem:[%s1972_s6 + $0x18] sm:$0xff] }
 0x630   :  { %v982_v56 = vpop.permute.xlu1 %981 }
 0x631   :  { %v991_v62 = vsel %vm989_vm3, %v988_v60, %v982_v56  ;;  %v1222_v56 = vld [vmem:[%s1972_s6 + $0x10] sm:$0xff] }
 0x632   :  { %v980_v59 = vpop.permute.xlu0 %979 }
 0x633   :  { %v990_v61 = vsel %vm989_vm3, %v987_v58, %v980_v59  ;;  %v1220_v58 = vld [vmem:[%s1972_s6] sm:$0xff]  ;;  %v1127_v59 = vsub.s32 6, %v1713_v25  ;;  %s1641_s6 = smov [#allocation2]  }
 0x634   :  { %1508 = vmatprep.mubr.msk.f32.mxu0 %vm30_vm0, %v990_v61  ;;  %s1324_s16 = sshll.u32 %s1641_s6, 4  ;;  %s1325_s16 = int_to_ptr.vmem [resolvable:$true] %s1324_s16 }
 0x635   :  { %1509 = vmatmul.mubr.msk.f32.vlgmr.msra.gmra.mxu0 %vm30_vm0, %v991_v62  ;;  %v1128_v60 = vrot.slane %v1719_v27, %v1127_v59  ;;  %s1611_s17 = scalar_lea.vmem %s1325_s16, 256  ;;  %p1616_p1 = scmp.lt.s32.totalorder %s1325_s16, %s1325_s16 }
 0x636   :  { %1523 = vmatpush3.msra.mxu0 %v1235_v21  ;;  %p1612_p0 = scmp.ne.s32.totalorder %s1325_s16, %s1611_s17  ;;  %p1617_p2 = scmp.lt.s32.totalorder %s1611_s17, %s1611_s17 }
 0x637   :  { %1524 = vmatprep.subr.mxu0 %v1234_v22 }
 0x638   :  { %1525 = vmatpush3.msra.mxu0 %v1234_v22  ;;  %p1618_p3 = por %p1617_p2, %p1616_p1 }
 0x639   :  { %1526 = vmatprep.subr.mxu0 %v1233_v23 }
 0x63a   :  { %1527 = vmatpush3.msra.mxu0 %v1233_v23  ;;  %p1619_p4 = pnand %p1618_p3, %p1612_p0 }
 0x63b   :  { %1528 = vmatprep.subr.mxu0 %v1232_v44 }
 0x63c   :  { %1529 = vmatpush3.msra.mxu0 %v1232_v44 }
 0x63d   :  { %1530 = vmatprep.subr.mxu0 %v1231_v45 }
 0x63e   :  { %1531 = vmatpush3.msra.mxu0 %v1231_v45 }
 0x63f   :  { %1532 = vmatprep.subr.mxu0 %v1230_v46 }
 0x640   :  { %1533 = vmatpush3.msra.mxu0 %v1230_v46 }
 0x641   :  { %1534 = vmatprep.subr.mxu0 %v1229_v48 }
 0x642   :  { %1535 = vmatpush3.msra.mxu0 %v1229_v48 }
 0x643   :  { %1536 = vmatprep.subr.mxu0 %v1228_v49 }
 0x644   :  { %1537 = vmatpush3.msra.mxu0 %v1228_v49 }
 0x645   :  { %1538 = vmatprep.subr.mxu0 %v1227_v50 }
 0x646   :  { %1539 = vmatpush3.msra.mxu0 %v1227_v50 }
 0x647   :  { %1540 = vmatprep.subr.mxu0 %v1226_v52 }
 0x648   :  { %1541 = vmatpush3.msra.mxu0 %v1226_v52 }
 0x649   :  { %1542 = vmatprep.subr.mxu0 %v1225_v53 }
 0x64a   :  { %1543 = vmatpush3.msra.mxu0 %v1225_v53 }
 0x64b   :  { %1544 = vmatprep.subr.mxu0 %v1224_v54 }
 0x64c   :  { %1545 = vmatpush3.msra.mxu0 %v1224_v54 }
 0x64d   :  { %1546 = vmatprep.subr.mxu0 %v1223_v55 }
 0x64e   :  { %1547 = vmatpush3.msra.mxu0 %v1223_v55 }
 0x64f   :  { %1548 = vmatprep.subr.mxu0 %v1222_v56 }
 0x650   :  { %1549 = vmatpush3.msra.mxu0 %v1222_v56 }
 0x651   :  { %1550 = vmatprep.subr.mxu0 %v1221_v57 }
 0x652   :  { %1551 = vmatpush3.msra.mxu0 %v1221_v57 }
 0x653   :  { %1552 = vmatprep.subr.mxu0 %v1220_v58 }
 0x654   :  { %1553 = vmatpush3.msra.mxu0 %v1220_v58 }
 0x6f5   :  { %v1510_v3 = vpop.f32.mrf.mxu0 }
 0x6f6   :  { %v1078_v4 = vadd.f32 %v1510_v3, %v999_v2 }
 0x6f7   :  { %v1072_v5 = vpop.f32.mrf.mxu0 }
 0x6f8   :  { %v1875_v6 = vadd.f32 %v1078_v4, %v1691_v1  ;;  %v1073_v7 = vadd.f32 %v1072_v5, %v999_v2 }
 0x6fa   :  { %v1878_v8 = vadd.f32 %v1073_v7, %v1686_v0  ;;  %v1086_v9 = vsel %vm30_vm0, %v1875_v6, 0.0 }
 0x6fb   :  { %1087 = vadd.xlane.f32.xlu1 %v1086_v9 }
 0x6fc   :  { %v1083_v10 = vsel %vm30_vm0, %v1878_v8, 0.0 }
 0x6fd   :  { %1084 = vadd.xlane.f32.xlu0 %v1083_v10 }
 0x784   :  { %v1088_v11 = vpop.xlane.xlu1 %1087 }
 0x785   :  { %v1090_v12 = vmul.f32 0.03125, %v1088_v11 }
 0x786   :  { %v1085_v13 = vpop.xlane.xlu0 %1084 }
 0x787   :  { %v1089_v14 = vmul.f32 0.03125, %v1085_v13  ;;  %v1092_v15 = vsub.f32 %v1875_v6, %v1090_v12 }
 0x789   :  { %v1091_v1 = vsub.f32 %v1878_v8, %v1089_v14  ;;  %v1094_v47 = vmul.f32 %v1092_v15, %v1092_v15 }
 0x78b   :  { %v1093_v16 = vmul.f32 %v1091_v1, %v1091_v1  ;;  %v1098_v51 = vsel %vm30_vm0, %v1094_v47, 0.0 }
 0x78d   :  { %v1095_v0 = vsel %vm30_vm0, %v1093_v16, 0.0 }
 0x78e   :  { %1096 = vadd.xlane.f32.xlu0 %v1095_v0 }
 0x792   :  { %1099 = vadd.xlane.f32.xlu0 %v1098_v51 }
 0x817   :  { %v1097_v24 = vpop.xlane.xlu0 %1096 }
 0x818   :  { %v1101_v26 = vmul.f32 0.03125, %v1097_v24 }
 0x81a   :  { %v1103_v28 = vadd.f32 1e-05, %v1101_v26 }
 0x81b   :  { %v1100_v29 = vpop.xlane.xlu0 %1099 }
 0x81c   :  { %1603 = vrsqrt.f32 %v1103_v28  ;;  %v1102_v30 = vmul.f32 0.03125, %v1100_v29 }
 0x81e   :  { %v1104_v31 = vadd.f32 1e-05, %v1102_v30 }
 0x820   :  { %1605 = vrsqrt.f32 %v1104_v31 }
 0x829   :  { %v1604_v35 = vpop.eup %1603 }
 0x82a   :  { %v1107_v36 = vmul.f32 %v1604_v35, %v1091_v1 }
 0x82c   :  { %v1113_v38 = vmul.f32 %v1112_v34, %v1107_v36 }
 0x82d   :  { %v1606_v39 = vpop.eup %1605 }
 0x82e   :  { %v1108_v40 = vmul.f32 %v1606_v39, %v1092_v15  ;;  %v1119_v41 = vadd.f32 %v1118_v37, %v1113_v38  ;;  %v1238_v15 = vsub.s32 7, %v1713_v25 }
 0x830   :  { %v1114_v42 = vmul.f32 %v1112_v34, %v1108_v40  ;;  %1519 = vmatprep.mubr.msk.f32.mxu1 %vm30_vm0, %v1119_v41  ;;  %v1239_v1 = vrot.slane %v1719_v27, %v1238_v15 }
 0x832   :  { %v1120_v43 = vadd.f32 %v1118_v37, %v1114_v42 }
 0x834   :  { %1520 = vmatmul.mubr.msk.f32.vlgmr.msra.gmra.mxu1 %vm30_vm0, %v1120_v43 }
 0x8f4   :  { %v1521_v61 = vpop.f32.mrf.mxu1 }
 0x8f5   :  { %v1207_v62 = vadd.f32 %v1521_v61, %v1128_v60 }
 0x8f6   :  { %v1201_v63 = vpop.f32.mrf.mxu1 }
 0x8f7   :  { %v1213_v2 = vmul.f32 0.70710677, %v1207_v62  ;;  %v1202_v3 = vadd.f32 %v1201_v63, %v1128_v60  ;;  %v1211_v12 = vmul.f32 0.5, %v1207_v62 }
 0x8f9   :  { %1607 = verf.f32 %v1213_v2  ;;  %v1212_v4 = vmul.f32 0.70710677, %v1202_v3  ;;  %v1210_v10 = vmul.f32 0.5, %v1202_v3 }
 0x8fb   :  { %1609 = verf.f32 %v1212_v4 }
 0x906   :  { %v1608_v5 = vpop.eup %1607 }
 0x907   :  { %v1217_v9 = vadd.f32 1.0, %v1608_v5 }
 0x908   :  { %v1610_v7 = vpop.eup %1609 }
 0x909   :  { %v1216_v11 = vadd.f32 1.0, %v1610_v7  ;;  %v1219_v14 = vmul.f32 %v1217_v9, %v1211_v12 }
 0x90b   :  { %v1218_v13 = vmul.f32 %v1216_v11, %v1210_v10 }
 0x90d   :  { %1554 = vmatprep.mubr.f32.mxu0 %v1218_v13 }
 0x90e   :  { %1555 = vmatmul.mubr.f32.vlgmr.msra.gmra.mxu0 %v1219_v14 }
 0x9ce   :  { %v1556_v16 = vpop.f32.mrf.mxu0 }
 0x9cf   :  { %v1312_v0 = vadd.f32 %v1556_v16, %v1239_v1 }
 0x9d0   :  { %v1306_v47 = vpop.f32.mrf.mxu0 }
 0x9d1   :  { %v1316_v51 = vadd.f32 %v1312_v0, %v1875_v6  ;;  %v1307_v17 = vadd.f32 %v1306_v47, %v1239_v1 }
 0x9d3   :  { %1318 = vst.msk [vmem:[#allocation2 + $0x8] sm:$0xff] %vm30_vm0, %v1316_v51  ;;  %v1315_v18 = vadd.f32 %v1307_v17, %v1878_v8 }
 0x9d5   :  { %1317 = vst.msk [vmem:[#allocation2] sm:$0xff] %vm30_vm0, %v1315_v18 }
 0x9d6   :  { %1622 = shalt.err (!%p1619_p4)
}
 0x9d7   :  { %s1642_s5 = smov 128  }
 0x9d8   :  { %1330 = dma.vmem_to_hbm [thread:$0]  %s1325_s16, 256, %s1973_s7, [#allocation3], %s1642_s5, %s1642_s5, %s1638_s20  }
 0x9d9   :  { %1631 = dma.done.wait [#allocation3], 256  }
 0x9da   :  { %1632 = vsyncadd [#allocation3], 4294967040 }
 0x9db   :  { %1334 = vsyncpa [#allocation3], 1 }

</bundles_post_ra>
